<compile_context>
chip_gen: v7x
topology: tpu7x:2x2x1
jax: 0.10.0
libtpu: 0.0.40
codegen_flags: <defaults>
</compile_context>

<pallas_src>
from functools import partial

import numpy as np
import jax
import jax.numpy as jnp
from jax.experimental import pallas as pl
from jax.experimental.pallas import tpu as pltpu


def _kmer_kernel(x_ref, out_ref, *, k, A, L, Lout, Npad, TB, CL):
    # x_ref:   (A, TB, L)   alphabet on a tiny leading axis, positions on lanes,
    #                       TB batch rows on sublanes.
    # out_ref: (TB, Npad)   lane-dense padded histogram tile (Npad >= A**k).

    # ---- argmax over the alphabet: A-1 unrolled compares, first-max tie-break
    best_val = x_ref[0]                                      # (TB, L) input dtype
    best_idx = jnp.zeros((TB, L), jnp.int32)
    for a in range(1, A):
        v = x_ref[a]
        take = v > best_val                                  # strict > keeps first index
        best_idx = jnp.where(take, a, best_idx)
        best_val = jnp.maximum(best_val, v)

    # ---- k-mer codes ('valid' convolution with flipped kernel [A^(k-1) .. A^0])
    #      codes[b, i] = sum_j ids[b, i+j] * A^(k-1-j),  i in [0, Lout)
    codes = jnp.zeros((TB, Lout), jnp.int32)
    for j in range(k):
        codes = codes + best_idx[:, j:j + Lout] * (A ** (k - 1 - j))

    # ---- per-row histogram over Npad bins, chunked over positions to bound
    #      register pressure (one-hot chunk is (TB, <=CL, Npad))
    bins = jax.lax.broadcasted_iota(jnp.int32, (1, 1, Npad), 2)
    counts = jnp.zeros((TB, Npad), jnp.float32)
    for c0 in range(0, Lout, CL):
        c1 = min(c0 + CL, Lout)
        cc = codes[:, c0:c1]                                 # (TB, cl)
        hit = (cc[:, :, None] == bins)                       # (TB, cl, Npad)
        counts = counts + jnp.sum(hit.astype(jnp.float32), axis=1)

    out_ref[...] = counts


def kmer_forward(sequence, *, k=3, alphabet_size=4, block_b=8):
    """Pallas equivalent of Kmer.forward. sequence: (B, L, A) float -> (B, A**k) f32."""
    B, L, A = sequence.shape
    assert A == alphabet_size
    Lout = L - k + 1
    assert Lout >= 1, "sequence length must be >= k"
    Nbins = alphabet_size ** k
    Npad = ((Nbins + 127) // 128) * 128          # lane-dense output width

    TB = block_b                                 # batch rows per grid step (sublanes)
    B_pad = ((B + TB - 1) // TB) * TB

    # Layout plumbing (wrapper-side, per review): (B, L, A) -> (A, B_pad, L) so the
    # alphabet axis never occupies the 128-wide lane dimension. Keep caller dtype.
    x = jnp.transpose(sequence, (2, 0, 1))       # (A, B, L)
    if B_pad != B:
        x = jnp.pad(x, ((0, 0), (0, B_pad - B), (0, 0)))

    kernel = partial(_kmer_kernel, k=k, A=A, L=L, Lout=Lout, Npad=Npad,
                     TB=TB, CL=min(Lout, 16))

    out = pl.pallas_call(
        kernel,
        out_shape=jax.ShapeDtypeStruct((B_pad, Npad), jnp.float32),
        grid=(B_pad // TB,),
        in_specs=[pl.BlockSpec((A, TB, L), lambda b: (0, b, 0))],
        out_specs=pl.BlockSpec((TB, Npad), lambda b: (b, 0)),
        compiler_params=pltpu.CompilerParams(
            dimension_semantics=("parallel",)),
    )(x)

    # Slice off padded batch rows and padded histogram lanes.
    return out[:B, :Nbins]


def _reference_numpy(sequence, k, alphabet_size):
    """Pure numpy reference mirroring the PyTorch module."""
    seq = np.argmax(np.asarray(sequence), axis=-1)
    kernel = [alphabet_size ** p for p in range(k)]
    kmers = np.apply_along_axis(
        partial(np.convolve, v=kernel, mode="valid"), 1, seq)
    vectors = np.zeros((seq.shape[0], alphabet_size ** k), dtype=np.float64)
    for d in range(len(seq)):
        bbins = np.bincount(kmers[d])
        vectors[d][:len(bbins)] += bbins
    return vectors.astype(np.float32)


if __name__ == "__main__":
    key = jax.random.PRNGKey(0)
    B, L, A, k = 16, 16, 4, 3   # 2 grid steps of 8 batch rows each

    labels = jax.random.randint(key, (B, L), 0, A)
    sequence = jax.nn.one_hot(labels, A, dtype=jnp.float32)  # (B, L, A)

    out = kmer_forward(sequence, k=k, alphabet_size=A)
    out = jax.block_until_ready(out)

    ref = _reference_numpy(sequence, k, A)
    assert out.shape == (B, A ** k), out.shape
    assert np.allclose(np.asarray(out), ref), (np.asarray(out), ref)

    print("KERNEL_OK")
</pallas_src>

<mosaic_0001>
module attributes {stable_mosaic.version = 11 : i64} {
  func.func @_kmer_kernel(%arg0: i32, %arg1: memref<4x8x16xf32, #tpu.memory_space<vmem>>, %arg2: memref<8x128xf32, #tpu.memory_space<vmem>>) attributes {dimension_semantics = [#tpu.dimension_semantics<parallel>], iteration_bounds = array<i64: 2>, scalar_prefetch = 0 : i64, scratch_operands = 0 : i64, tpu.core_type = #tpu.core_type<tc>, window_params = [{transform_indices = @transform_0, window_bounds = array<i64: 4, 8, 16>}, {transform_indices = @transform_1, window_bounds = array<i64: 8, 128>}]} {
    %c0 = arith.constant 0 : index
    %c0_0 = arith.constant 0 : index
    %c0_1 = arith.constant 0 : index
    %0 = vector.load %arg1[%c0, %c0_0, %c0_1] : memref<4x8x16xf32, #tpu.memory_space<vmem>>, vector<1x8x16xf32>
    %1 = vector.shape_cast %0 : vector<1x8x16xf32> to vector<8x16xf32>
    %c0_i32 = arith.constant 0 : i32
    %2 = vector.broadcast %c0_i32 : i32 to vector<8x16xi32>
    %c1 = arith.constant 1 : index
    %c0_2 = arith.constant 0 : index
    %c0_3 = arith.constant 0 : index
    %3 = vector.load %arg1[%c1, %c0_2, %c0_3] : memref<4x8x16xf32, #tpu.memory_space<vmem>>, vector<1x8x16xf32>
    %4 = vector.shape_cast %3 : vector<1x8x16xf32> to vector<8x16xf32>
    %5 = arith.cmpf ogt, %4, %1 : vector<8x16xf32>
    %c1_i32 = arith.constant 1 : i32
    %6 = vector.broadcast %c1_i32 : i32 to vector<8x16xi32>
    %7 = arith.select %5, %6, %2 : vector<8x16xi1>, vector<8x16xi32>
    %8 = arith.maximumf %1, %4 : vector<8x16xf32>
    %c2 = arith.constant 2 : index
    %c0_4 = arith.constant 0 : index
    %c0_5 = arith.constant 0 : index
    %9 = vector.load %arg1[%c2, %c0_4, %c0_5] : memref<4x8x16xf32, #tpu.memory_space<vmem>>, vector<1x8x16xf32>
    %10 = vector.shape_cast %9 : vector<1x8x16xf32> to vector<8x16xf32>
    %11 = arith.cmpf ogt, %10, %8 : vector<8x16xf32>
    %c2_i32 = arith.constant 2 : i32
    %12 = vector.broadcast %c2_i32 : i32 to vector<8x16xi32>
    %13 = arith.select %11, %12, %7 : vector<8x16xi1>, vector<8x16xi32>
    %14 = arith.maximumf %8, %10 : vector<8x16xf32>
    %c3 = arith.constant 3 : index
    %c0_6 = arith.constant 0 : index
    %c0_7 = arith.constant 0 : index
    %15 = vector.load %arg1[%c3, %c0_6, %c0_7] : memref<4x8x16xf32, #tpu.memory_space<vmem>>, vector<1x8x16xf32>
    %16 = vector.shape_cast %15 : vector<1x8x16xf32> to vector<8x16xf32>
    %17 = arith.cmpf ogt, %16, %14 : vector<8x16xf32>
    %c3_i32 = arith.constant 3 : i32
    %18 = vector.broadcast %c3_i32 : i32 to vector<8x16xi32>
    %19 = arith.select %17, %18, %13 : vector<8x16xi1>, vector<8x16xi32>
    %c0_i32_8 = arith.constant 0 : i32
    %20 = vector.broadcast %c0_i32_8 : i32 to vector<8x14xi32>
    %21 = vector.extract_strided_slice %19 {offsets = [0, 0], sizes = [8, 14], strides = [1, 1]} : vector<8x16xi32> to vector<8x14xi32>
    %c16_i32 = arith.constant 16 : i32
    %22 = vector.broadcast %c16_i32 : i32 to vector<8x14xi32>
    %23 = arith.muli %21, %22 : vector<8x14xi32>
    %24 = arith.addi %20, %23 : vector<8x14xi32>
    %25 = vector.extract_strided_slice %19 {offsets = [0, 1], sizes = [8, 14], strides = [1, 1]} : vector<8x16xi32> to vector<8x14xi32>
    %c4_i32 = arith.constant 4 : i32
    %26 = vector.broadcast %c4_i32 : i32 to vector<8x14xi32>
    %27 = arith.muli %25, %26 : vector<8x14xi32>
    %28 = arith.addi %24, %27 : vector<8x14xi32>
    %29 = vector.extract_strided_slice %19 {offsets = [0, 2], sizes = [8, 14], strides = [1, 1]} : vector<8x16xi32> to vector<8x14xi32>
    %c1_i32_9 = arith.constant 1 : i32
    %30 = vector.broadcast %c1_i32_9 : i32 to vector<8x14xi32>
    %31 = arith.muli %29, %30 : vector<8x14xi32>
    %32 = arith.addi %28, %31 : vector<8x14xi32>
    %33 = tpu.iota {dimensions = array<i32: 2>} : vector<1x1x128xi32>
    %cst = arith.constant 0.000000e+00 : f32
    %34 = vector.broadcast %cst : f32 to vector<8x128xf32>
    %35 = vector.shape_cast %32 : vector<8x14xi32> to vector<8x14x1xi32>
    %36 = vector.broadcast %35 : vector<8x14x1xi32> to vector<8x14x128xi32>
    %37 = vector.broadcast %33 : vector<1x1x128xi32> to vector<8x14x128xi32>
    %38 = arith.cmpi eq, %36, %37 : vector<8x14x128xi32>
    %39 = arith.extui %38 : vector<8x14x128xi1> to vector<8x14x128xi32>
    %40 = arith.sitofp %39 : vector<8x14x128xi32> to vector<8x14x128xf32>
    %cst_10 = arith.constant dense<0.000000e+00> : vector<8x128xf32>
    %41 = vector.multi_reduction <add>, %40, %cst_10 [1] : vector<8x14x128xf32> to vector<8x128xf32>
    %42 = arith.addf %34, %41 : vector<8x128xf32>
    %c0_11 = arith.constant 0 : index
    %c0_12 = arith.constant 0 : index
    %43 = vector.load %arg2[%c0_11, %c0_12] : memref<8x128xf32, #tpu.memory_space<vmem>>, vector<8x128xf32>
    tpu.vector_store %arg2[%c0_11, %c0_12], %42 {strides = array<i32>} : memref<8x128xf32, #tpu.memory_space<vmem>>, vector<8x128xf32>,
    return
  }
  func.func @transform_0(%arg0: i32) -> (i32, i32, i32) {
    %c0_i32 = arith.constant 0 : i32
    %c0_i32_0 = arith.constant 0 : i32
    %c0_i32_1 = arith.constant 0 : i32
    return %c0_i32, %arg0, %c0_i32_0 : i32, i32, i32
  }
  func.func @transform_1(%arg0: i32) -> (i32, i32) {
    %c0_i32 = arith.constant 0 : i32
    %c0_i32_0 = arith.constant 0 : i32
    return %arg0, %c0_i32 : i32, i32
  }
}

</mosaic_0001>

<bundles_post_ra>
// kernel: tpu_custom_call.1
= control target key start
LH: loop header
LB: loop body
LE: loop exit
PB: predicated region body
PF: predicated region fallthrough
CT: control target
= control target key end

     0   :  { %6 = vsyncpa [#allocation3], 0  ;;  %s882_s0 = inlined_call_operand.hbm [shape: f32[4,16,16], index: 0, kind: input, shape index: {}]   ;;  %s883_s1 = inlined_call_operand.hbm [shape: f32[16,128], index: 1, kind: output, shape index: {}]  }
   0x1   :  { %8 = vsyncpa [#allocation3 + $0x1], 0 }
   0x2   :  { %9 = vsyncpa [#allocation4], 0 }
   0x3   :  { %11 = vsyncpa [#allocation4 + $0x1], 0  ;;  %s677_s6 = smov 0   ;;  %s679_s7 = smov 0  }
   0x4   :  { %s681_s8 = smov 0   ;;  %s683_s9 = smov 0  }
   0x5 LB: > { %s698_s10 = sadd.s32 4294967295, %s656_s9   ;;  %s476_s11 = sadd.s32 4294967294, %s656_s9   ;;  %s656_s9 = sphi %s683_s9, %s897_s9   ;;  %s652_s8 = sphi %s681_s8, %s896_s8   ;;  %s648_s7 = sphi %s679_s7, %s895_s7   ;;  %s644_s6 = sphi %s677_s6, %s894_s6  }
   0x6   : > { %s702_s12 = sadd.s32 1, %s656_s9   ;;  %s24_s13 = sadd.s32 1, %s652_s8 }
   0x7   : > { %s21_s14 = ssub.s32 %s656_s9, %s702_s12  ;;  %p31_p0 = scmp.ne.s32.totalorder %s652_s8, %s648_s7 }
   0x8   : > { %p22_p1 = scmp.eq.s32.totalorder %s21_s14, 0  ;;  %p32_p2 = scmp.eq.s32.totalorder %s656_s9, 0 }
   0x9   : > { %p37_p3 = scmp.ne.s32.totalorder %s648_s7, %s644_s6  ;;  %p38_p4 = scmp.eq.s32.totalorder %s698_s10, 0 }
   0xa   : > { %s714_s15 = scalar_select %p22_p1, %s652_s8, %s24_s13  }
   0xb   : > { %p716_p5 = por %p32_p2, %p31_p0  ;;  %p720_p6 = por %p38_p4, %p37_p3 }
   0xc   : > { %p61_p7 = scmp.eq.s32.totalorder %s698_s10, 1  ;;  %p67_p8 = scmp.eq.s32.totalorder %s476_s11, 1 }
   0xd   : > { %p519_p10 = scmp.lt.s32.totalorder %s656_s9, 2  ;;  %s87_s20 = sand.u32 1, %s652_s8  }
   0xe   : > { %p727_p11 = por %p61_p7, %p31_p0  ;;  %p731_p12 = por %p67_p8, %p37_p3 }
   0xf   : > { %s480_s21 = sshll.u32 %s656_s9, 7  ;;  %s479_s22 = sshll.u32 %s87_s20, 5 }
  0x10   : > { %s887_s18 = scalar_select %p727_p11, 1, 0 }
  0x11   : > { %s888_s19 = scalar_select %p731_p12, 1, 0 }
  0x12   : > { %s740_s25 = scalar_lea.hbm %s882_s0, %s480_s21  ;;  %s91_s26 = scalar_lea.vmem [#allocation2], %s479_s22 }
  0x13   : > { %s97_s27 = sshll.u32 %s91_s26, 4  ;;  %p744_p13 = pnand %p519_p10, %p716_p5  ;;  %s748_s27 = int_to_ptr.vmem [resolvable:$true] %s97_s27 }
  0x14   : > { %s751_s29 = scalar_lea.sflag [#allocation3], %s87_s20  ;;  %s560_s30 = scalar_lea.hbm %s740_s25, 512 }
  0x15   : > { %p561_p1 = scmp.ne.s32.totalorder %s740_s25, %s560_s30  ;;  %p562_p2 = pneg %p744_p13 }
  0x16   : > { %s565_s4 = scalar_lea.hbm %s882_s0, 1024  ;;  %p566_p5 = scmp.lt.u32.totalorder %s740_s25, %s882_s0 }
  0x17   : > { %p563_p3 = pnand %p562_p2, %p561_p1  ;;  %p567_p7 = scmp.lt.u32.totalorder %s565_s4, %s560_s30 }
  0x18   : > { %p569_p10 = scmp.lt.u32.totalorder %s560_s30, %s740_s25 }
  0x19   : > { %p564_p4 = pneg %p563_p3  ;;  %p568_p8 = por %p567_p7, %p566_p5 }
  0x1b   : > { %p570_p9 = por %p569_p10, %p568_p8 }
  0x1d   : > { %p571_p0 = pnand %p570_p9, %p564_p4 }
  0x1f   : > { %574 = shalt.err (!%p571_p0)
}
  0x20   : > { %s575_s13 = scalar_lea.vmem %s748_s27, 512  ;;  %s658_s14 = smov [#allocation2]  }
  0x21   : > { %p576_p1 = scmp.ne.s32.totalorder %s748_s27, %s575_s13  ;;  %s580_s16 = sshll.u32 %s658_s14, 4  ;;  %s581_s16 = int_to_ptr.vmem [resolvable:$false] %s580_s16 }
  0x22   : > { %s582_s20 = scalar_lea.vmem %s581_s16, 1024  ;;  %p583_p11 = scmp.lt.s32.totalorder %s748_s27, %s581_s16 }
  0x23   : > { %p578_p3 = pnand %p576_p1, %p562_p2  ;;  %p584_p5 = scmp.lt.s32.totalorder %s582_s20, %s575_s13 }
  0x25   : > { %p579_p12 = pneg %p578_p3  ;;  %p585_p7 = por %p584_p5, %p583_p11 }
  0x27   : > { %p586_p8 = pnand %p585_p7, %p579_p12 }
  0x29   : > { %589 = shalt.err (!%p586_p8)
}
  0x2a   : > { %s659_s21 = smov 256   ;;  %s660_s22 = smov 128  }
  0x2b   : > { %s661_s23 = smov 8   ;;  %p105_p9 = scmp.lt.s32.totalorder %s656_s9, 3 }
  0x2c   : > { %514 = dma.hbm_to_vmem [thread:$0]  (!%p744_p13), %s740_s25, 512, %s748_s27, %s751_s29, %s659_s21, %s660_s22, %s661_s23  }
  0x2d   : > { %p890_p0 = scmp.ge.s32.totalorder %s656_s9, 1 }
  0x2f   : > { %p106_p2 = pnand %p890_p0, %p105_p9 }
  0x30   : > { %s783_s24 = sand.u32 (!%p106_p2), 1, %s648_s7  }
  0x31   : > { %109 = sbr.rel (%p106_p2) target bundleno = 367 (0x16f), region = 24  ;;  %s482_s26 = sshll.u32 (!%p106_p2), %s783_s24, 5 }
  0x32   : > { %s112_s30 = scalar_lea.sflag (!%p106_p2), [#allocation3], %s783_s24  ;;  %s115_s2 = scalar_lea.vmem (!%p106_p2), [#allocation2], %s482_s26 }
  0x38   : > { %635 = dma.done.wait (%p720_p6), %s112_s30, 512  }
  0x39   : > { %637 = vsyncadd (%p720_p6), %s112_s30, 4294966784  ;;  %v134_v0 = vld [vmem:[%s115_s2] sm:$0xff]  ;;  %v484_v1 = vld [vmem:[%s115_s2 + $0x8] sm:$0xff]  ;;  %v662_v4 = vmov 0   ;;  %s663_s25 = smov 127   ;;  %s664_s27 = smov 126   ;;  %v157_v11 = vlaneseq }
  0x3a   : > { %v485_v2 = vld [vmem:[%s115_s2 + $0x10] sm:$0xff]  ;;  %vm137_vm0 = vcmp.gt.f32.partialorder %v484_v1, %v134_v0  ;;  %v139_v3 = vmax.f32 %v134_v0, %v484_v1  ;;  %v486_v6 = vld [vmem:[%s115_s2 + $0x18] sm:$0xff]  ;;  %v665_v41 = vmov 0.0   ;;  %vm295_vm8 = vcmask 1045504   ;;  %s483_s17 = sshll.u32 %s783_s24, 3  ;;  %s504_s28 = sshll.u32 %s698_s10, 7 }
  0x3b   : > { %v138_v5 = vsel %vm137_vm0, 1, %v662_v4  ;;  %v160_v13 = vshrl.u32 %v157_v11, 7  ;;  %v791_v36 = vand.u32 127, %v157_v11  ;;  %s133_s29 = scalar_lea.vmem [#allocation5], %s483_s17  ;;  %s838_s11 = scalar_lea.hbm %s883_s1, %s504_s28 }
  0x3c   : > { %vm142_vm1 = vcmp.gt.f32.partialorder %v485_v2, %v139_v3  ;;  %v144_v7 = vmax.f32 %v139_v3, %v485_v2  ;;  %s406_s3 = sshll.u32 %s133_s29, 4  ;;  %s393_s10 = scalar_lea.sflag [#allocation4], %s783_s24  ;;  %s840_s3 = int_to_ptr.vmem [resolvable:$true] %s406_s3 }
  0x3d   : > { %v143_v8 = vsel %vm142_vm1, 2, %v138_v5  ;;  %v161_v16 = vsub.s32 0, %v160_v13  ;;  %v183_v20 = vsub.s32 2, %v160_v13  ;;  %v172_v21 = vsub.s32 1, %v160_v13  ;;  %s590_s13 = scalar_lea.vmem %s840_s3, 128  ;;  %p891_p11 = scmp.ne.s32.totalorder %s887_s18, 0 }
  0x3e   : > { %vm147_vm2 = vcmp.gt.f32.partialorder %v486_v6, %v144_v7  ;;  %v194_v24 = vsub.s32 3, %v160_v13  ;;  %v205_v26 = vsub.s32 4, %v160_v13  ;;  %v216_v28 = vsub.s32 5, %v160_v13  ;;  %p591_p6 = scmp.ne.s32.totalorder %s840_s3, %s590_s13  ;;  %s666_s14 = smov [#allocation5]  }
  0x3f   : > { %v148_v9 = vsel %vm147_vm2, 3, %v143_v8  ;;  %v227_v30 = vsub.s32 6, %v160_v13  ;;  %v238_v32 = vsub.s32 7, %v160_v13  ;;  %s594_s16 = sshll.u32 %s666_s14, 4  ;;  %s595_s16 = int_to_ptr.vmem [resolvable:$false] %s594_s16 }
  0x40   : > { %v150_v10 = vmul.u32 4, %v148_v9  ;;  %v149_v12 = vmul.u32 16, %v148_v9  ;;  %p592_p12 = pnand %p591_p6, %p891_p11  ;;  %s596_s20 = scalar_lea.vmem %s595_s16, 256 }
  0x41   : > { %p597_p4 = scmp.lt.s32.totalorder %s840_s3, %s595_s16  ;;  %p598_p10 = scmp.lt.s32.totalorder %s596_s20, %s590_s13 }
  0x42   : > { %151 = vrot.lane.b32.xlu0 %v150_v10, %s663_s25  ;;  %p593_p13 = pneg %p592_p12 }
  0x43   : > { %p599_p1 = por %p598_p10, %p597_p4 }
  0x45   : > { %p600_p3 = pnand %p599_p1, %p593_p13 }
  0x46   : > { %154 = vrot.lane.b32.xlu0 %v148_v9, %s664_s27 }
  0xb4   : > { %v152_v14 = vpop.permute.xlu0 %151 }
  0xb5   : > { %v153_v15 = vadd.s32 %v152_v14, %v149_v12 }
  0xb8   : > { %v155_v17 = vpop.permute.xlu0 %154 }
  0xb9   : > { %v156_v18 = vadd.s32 %v155_v17, %v153_v15 }
  0xbb   : > { %v162_v19 = vrot.slane %v156_v18, %v161_v16  ;;  %v184_v22 = vrot.slane %v156_v18, %v183_v20  ;;  %v173_v23 = vrot.slane %v156_v18, %v172_v21  ;;  %v195_v25 = vrot.slane %v156_v18, %v194_v24 }
  0xbc   : > { %v206_v27 = vrot.slane %v156_v18, %v205_v26  ;;  %v217_v29 = vrot.slane %v156_v18, %v216_v28  ;;  %v228_v31 = vrot.slane %v156_v18, %v227_v30  ;;  %v239_v33 = vrot.slane %v156_v18, %v238_v32 }
  0xbd   : > { %164 = vbcast.lane.b32.xlu0 %v162_v19, 256  ;;  %168 = vbcast.lane.b32.xlu1 %v162_v19, 264 }
  0xc1   : > { %190 = vbcast.lane.b32.xlu0 %v184_v22, 264  ;;  %179 = vbcast.lane.b32.xlu1 %v173_v23, 264 }
  0xc5   : > { %201 = vbcast.lane.b32.xlu0 %v195_v25, 264  ;;  %175 = vbcast.lane.b32.xlu1 %v173_v23, 256 }
  0xc9   : > { %212 = vbcast.lane.b32.xlu0 %v206_v27, 264  ;;  %186 = vbcast.lane.b32.xlu1 %v184_v22, 256 }
  0xcd   : > { %223 = vbcast.lane.b32.xlu0 %v217_v29, 264  ;;  %197 = vbcast.lane.b32.xlu1 %v195_v25, 256 }
  0xd1   : > { %234 = vbcast.lane.b32.xlu0 %v228_v31, 264  ;;  %208 = vbcast.lane.b32.xlu1 %v206_v27, 256 }
  0xd5   : > { %245 = vbcast.lane.b32.xlu0 %v239_v33, 264  ;;  %219 = vbcast.lane.b32.xlu1 %v217_v29, 256 }
  0xd9   : > { %230 = vbcast.lane.b32.xlu1 %v228_v31, 256 }
  0xdd   : > { %241 = vbcast.lane.b32.xlu1 %v239_v33, 256 }
 0x12f   : > { %v165_v34 = vpop.permute.xlu0 %164  ;;  %v169_v35 = vpop.permute.xlu1 %168 }
 0x130   : > { %vm248_vm4 = vcmp.eq.s32.totalorder %v169_v35, %v791_v36  ;;  %vm247_vm7 = vcmp.eq.s32.totalorder %v165_v34, %v791_v36 }
 0x131   : > { %v488_v43 = vsel %vm248_vm4, 1.0, %v665_v41  ;;  %v487_v49 = vsel %vm247_vm7, 1.0, %v665_v41  ;;  %vm376_vm4 = vcmask 1041409   ;;  %vm382_vm7 = vcmask 1044484  }
 0x132   : > { %v296_v50 = vsel %vm295_vm8, %v488_v43, 0.0 }
 0x133   : > { %v191_v37 = vpop.permute.xlu0 %190  ;;  %v180_v38 = vpop.permute.xlu1 %179  ;;  %v297_v58 = vadd.f32 %v487_v49, %v296_v50 }
 0x134   : > { %vm250_vm3 = vcmp.eq.s32.totalorder %v180_v38, %v791_v36  ;;  %vm252_vm5 = vcmp.eq.s32.totalorder %v191_v37, %v791_v36 }
 0x135   : > { %v490_v42 = vsel %vm250_vm3, 1.0, %v665_v41  ;;  %v492_v45 = vsel %vm252_vm5, 1.0, %v665_v41  ;;  %v298_v2 = vrot.slane %v297_v58, 4  ;;  %vm378_vm5 = vcmask 1042434  }
 0x136   : > { %v304_v48 = vsel %vm295_vm8, %v490_v42, 0.0  ;;  %v312_v53 = vsel %vm295_vm8, %v492_v45, 0.0 }
 0x137   : > { %v202_v39 = vpop.permute.xlu0 %201  ;;  %v176_v40 = vpop.permute.xlu1 %175  ;;  %v299_v10 = vadd.f32 %v298_v2, %v297_v58 }
 0x138   : > { %vm249_vm6 = vcmp.eq.s32.totalorder %v176_v40, %v791_v36  ;;  %vm254_vm9 = vcmp.eq.s32.totalorder %v202_v39, %v791_v36 }
 0x139   : > { %v489_v44 = vsel %vm249_vm6, 1.0, %v665_v41  ;;  %v494_v54 = vsel %vm254_vm9, 1.0, %v665_v41  ;;  %v300_v22 = vrot.slane %v299_v10, 2  ;;  %vm380_vm6 = vcmask 1043459  }
 0x13a   : > { %v305_v51 = vadd.f32 %v489_v44, %v304_v48  ;;  %v320_v59 = vsel %vm295_vm8, %v494_v54, 0.0  ;;  %vm386_vm9 = vcmask 1046534  }
 0x13b   : > { %v213_v46 = vpop.permute.xlu0 %212  ;;  %v187_v47 = vpop.permute.xlu1 %186  ;;  %v301_v35 = vadd.f32 %v300_v22, %v299_v10 }
 0x13c   : > { %vm251_vm10 = vcmp.eq.s32.totalorder %v187_v47, %v791_v36  ;;  %v306_v60 = vrot.slane %v305_v51, 4  ;;  %vm256_vm12 = vcmp.eq.s32.totalorder %v213_v46, %v791_v36 }
 0x13d   : > { %v491_v52 = vsel %vm251_vm10, 1.0, %v665_v41  ;;  %v496_v3 = vsel %vm256_vm12, 1.0, %v665_v41  ;;  %v302_v49 = vrot.slane %v301_v35, 1  ;;  %vm388_vm10 = vcmask 1047559  }
 0x13e   : > { %v313_v55 = vadd.f32 %v491_v52, %v312_v53  ;;  %v307_v5 = vadd.f32 %v306_v60, %v305_v51  ;;  %v328_v6 = vsel %vm295_vm8, %v496_v3, 0.0 }
 0x13f   : > { %v224_v56 = vpop.permute.xlu0 %223  ;;  %v198_v57 = vpop.permute.xlu1 %197 }
 0x140   : > { %vm253_vm11 = vcmp.eq.s32.totalorder %v198_v57, %v791_v36  ;;  %v314_v63 = vrot.slane %v313_v55, 4  ;;  %vm258_vm13 = vcmp.eq.s32.totalorder %v224_v56, %v791_v36  ;;  %v308_v15 = vrot.slane %v307_v5, 2 }
 0x141   : > { %v493_v61 = vsel %vm253_vm11, 1.0, %v665_v41  ;;  %v498_v11 = vsel %vm258_vm13, 1.0, %v665_v41 }
 0x142   : > { %v321_v62 = vadd.f32 %v493_v61, %v320_v59  ;;  %v315_v7 = vadd.f32 %v314_v63, %v313_v55  ;;  %v336_v19 = vsel %vm295_vm8, %v498_v11, 0.0  ;;  %v309_v26 = vadd.f32 %v308_v15, %v307_v5 }
 0x143   : > { %v235_v0 = vpop.permute.xlu0 %234  ;;  %v209_v1 = vpop.permute.xlu1 %208  ;;  %v303_v59 = vadd.f32 %v302_v49, %v301_v35 }
 0x144   : > { %v322_v4 = vrot.slane %v321_v62, 4  ;;  %vm255_vm14 = vcmp.eq.s32.totalorder %v209_v1, %v791_v36  ;;  %vm260_vm15 = vcmp.eq.s32.totalorder %v235_v0, %v791_v36  ;;  %v316_v18 = vrot.slane %v315_v7, 2 }
 0x145   : > { %v495_v8 = vsel %vm255_vm14, 1.0, %v665_v41  ;;  %v500_v16 = vsel %vm260_vm15, 1.0, %v665_v41  ;;  %v310_v44 = vrot.slane %v309_v26, 1 }
 0x146   : > { %v323_v12 = vadd.f32 %v322_v4, %v321_v62  ;;  %v329_v13 = vadd.f32 %v495_v8, %v328_v6  ;;  %v344_v27 = vsel %vm295_vm8, %v500_v16, 0.0  ;;  %v317_v32 = vadd.f32 %v316_v18, %v315_v7 }
 0x147   : > { %v220_v9 = vpop.permute.xlu1 %219  ;;  %v246_v14 = vpop.permute.xlu0 %245  ;;  %v311_v55 = vadd.f32 %v310_v44, %v309_v26 }
 0x148   : > { %vm257_vm0 = vcmp.eq.s32.totalorder %v220_v9, %v791_v36  ;;  %v330_v17 = vrot.slane %v329_v13, 4  ;;  %vm262_vm1 = vcmp.eq.s32.totalorder %v246_v14, %v791_v36  ;;  %v324_v23 = vrot.slane %v323_v12, 2 }
 0x149   : > { %v497_v20 = vsel %vm257_vm0, 1.0, %v665_v41  ;;  %v502_v29 = vsel %vm262_vm1, 1.0, %v665_v41  ;;  %v318_v47 = vrot.slane %v317_v32, 1  ;;  %v377_v63 = vsel %vm376_vm4, %v311_v55, %v303_v59 }
 0x14a   : > { %v331_v24 = vadd.f32 %v330_v17, %v329_v13  ;;  %v337_v25 = vadd.f32 %v497_v20, %v336_v19  ;;  %v325_v37 = vadd.f32 %v324_v23, %v323_v12  ;;  %v352_v40 = vsel %vm295_vm8, %v502_v29, 0.0 }
 0x14b   : > { %v231_v21 = vpop.permute.xlu1 %230  ;;  %v319_v57 = vadd.f32 %v318_v47, %v317_v32  ;;  %vm384_vm8 = vcmask 1045509  }
 0x14c   : > { %vm259_vm2 = vcmp.eq.s32.totalorder %v231_v21, %v791_v36  ;;  %v332_v28 = vrot.slane %v331_v24, 2  ;;  %v338_v30 = vrot.slane %v337_v25, 4  ;;  %v326_v50 = vrot.slane %v325_v37, 1 }
 0x14d   : > { %v499_v31 = vsel %vm259_vm2, 1.0, %v665_v41  ;;  %v379_v2 = vsel %vm378_vm5, %v319_v57, %v377_v63 }
 0x14e   : > { %v345_v33 = vadd.f32 %v499_v31, %v344_v27  ;;  %v339_v38 = vadd.f32 %v338_v30, %v337_v25  ;;  %v333_v39 = vadd.f32 %v332_v28, %v331_v24 }
 0x14f   : > { %v242_v34 = vpop.permute.xlu1 %241 }
 0x150   : > { %vm261_vm3 = vcmp.eq.s32.totalorder %v242_v34, %v791_v36  ;;  %v346_v42 = vrot.slane %v345_v33, 4  ;;  %v340_v45 = vrot.slane %v339_v38, 2  ;;  %v334_v53 = vrot.slane %v333_v39, 1 }
 0x151   : > { %v501_v43 = vsel %vm261_vm3, 1.0, %v665_v41  ;;  %v327_v41 = vadd.f32 %v326_v50, %v325_v37 }
 0x152   : > { %v353_v46 = vadd.f32 %v501_v43, %v352_v40  ;;  %v347_v48 = vadd.f32 %v346_v42, %v345_v33  ;;  %v341_v51 = vadd.f32 %v340_v45, %v339_v38  ;;  %v335_v61 = vadd.f32 %v334_v53, %v333_v39 }
 0x153   : > { %v381_v4 = vsel %vm380_vm6, %v327_v41, %v379_v2 }
 0x154   : > { %v354_v52 = vrot.slane %v353_v46, 4  ;;  %v348_v54 = vrot.slane %v347_v48, 2  ;;  %v342_v36 = vrot.slane %v341_v51, 1  ;;  %v383_v6 = vsel %vm382_vm7, %v335_v61, %v381_v4 }
 0x156   : > { %v355_v56 = vadd.f32 %v354_v52, %v353_v46  ;;  %v349_v58 = vadd.f32 %v348_v54, %v347_v48  ;;  %v343_v0 = vadd.f32 %v342_v36, %v341_v51 }
 0x158   : > { %v356_v60 = vrot.slane %v355_v56, 2  ;;  %v350_v62 = vrot.slane %v349_v58, 1  ;;  %v385_v8 = vsel %vm384_vm8, %v343_v0, %v383_v6 }
 0x15a   : > { %v357_v1 = vadd.f32 %v356_v60, %v355_v56  ;;  %v351_v3 = vadd.f32 %v350_v62, %v349_v58 }
 0x15c   : > { %v358_v5 = vrot.slane %v357_v1, 1  ;;  %v387_v9 = vsel %vm386_vm9, %v351_v3, %v385_v8 }
 0x15e   : > { %v359_v7 = vadd.f32 %v358_v5, %v357_v1 }
 0x160   : > { %v389_v10 = vsel %vm388_vm10, %v359_v7, %v387_v9 }
 0x161   : > { %391 = vst [vmem:[%s133_s29] sm:$0xff] %v389_v10 }
 0x162   : > { %603 = shalt.err (!%p600_p3)
}
 0x163   : > { %s604_s21 = scalar_lea.hbm %s838_s11, 128  ;;  %s608_s24 = scalar_lea.hbm %s883_s1, 256 }
 0x164   : > { %p605_p5 = scmp.ne.s32.totalorder %s838_s11, %s604_s21  ;;  %p609_p9 = scmp.lt.u32.totalorder %s838_s11, %s883_s1 }
 0x165   : > { %p610_p0 = scmp.lt.u32.totalorder %s608_s24, %s604_s21  ;;  %p612_p6 = scmp.lt.u32.totalorder %s604_s21, %s838_s11 }
 0x166   : > { %p606_p7 = pnand %p605_p5, %p891_p11 }
 0x167   : > { %p611_p2 = por %p610_p0, %p609_p9 }
 0x168   : > { %p607_p8 = pneg %p606_p7 }
 0x169   : > { %p613_p12 = por %p612_p6, %p611_p2 }
 0x16b   : > { %p614_p13 = pnand %p613_p12, %p607_p8 }
 0x16d   : > { %617 = shalt.err (!%p614_p13)
}
 0x16e   : > { %509 = dma.vmem_to_hbm [thread:$0]  (%p891_p11), %s840_s3, 128, %s838_s11, %s393_s10  }
 0x16f PF: > { %s418_s2 = sand.u32 1, %s644_s6   ;;  %p892_p4 = scmp.ne.s32.totalorder %s888_s19, 0 }
 0x170   : > { %p893_p10 = scmp.ge.s32.totalorder %s656_s9, 2  ;;  %s419_s25 = scalar_lea.sflag [#allocation4], %s418_s2 }
 0x172   : > { %p516_p1 = pnand %p893_p10, %p892_p4 }
 0x174   : > { %639 = dma.done.wait (!%p516_p1), %s419_s25, 128  }
 0x175   : > { %641 = vsyncadd (!%p516_p1), %s419_s25, 4294967168  ;;  %p14_p3 = scmp.ge.s32.totalorder %s702_s12, 4   ;;  %s894_s6 = smov %s648_s7 }
 0x176   : > { %s895_s7 = smov %s652_s8  ;;  %s896_s8 = smov %s714_s15 }
 0x177   : > { %s897_s9 = smov %s702_s12  ;;  %16 = sbr.rel (!%p14_p3) target bundleno = 5 (0x5), region = 72 }
 0x17e   :  { %424 = vsyncpa [#allocation3], 1 }
 0x17f   :  { %426 = vsyncpa [#allocation3 + $0x1], 1 }
 0x180   :  { %427 = vsyncpa [#allocation4], 1 }
 0x181   :  { %429 = vsyncpa [#allocation4 + $0x1], 1 }

</bundles_post_ra>
